<compile_context>
chip_gen: v6e
topology: v6e:2x2x1
jax: 0.10.0
libtpu: 0.0.40
codegen_flags: <defaults>
</compile_context>

<pallas_src>
import functools

import jax
import jax.numpy as jnp
import numpy as np
from jax.experimental import pallas as pl
from jax.experimental.pallas import tpu as pltpu

TILE_B = 128  # batch tile, mapped to the lane axis


def critic_kernel(x_ref, w1_ref, b1_ref, w2_ref, b2_ref, w3_ref, b3_ref,
                  w4_ref, b4_ref, out_ref):
    # x_ref: (hidden_rnn + 1, TILE_B)  == [xh ; a] transposed, batch on lanes.
    x = x_ref[...]

    # fc1h + fc1a fused into a single matmul (stacked weights, folded bias).
    h = jnp.dot(w1_ref[...], x.astype(w1_ref.dtype),
                preferred_element_type=jnp.float32)
    h = jnp.maximum(h + b1_ref[...], 0.0)                      # (F1, TILE_B)

    h = jnp.dot(w2_ref[...], h.astype(w2_ref.dtype),
                preferred_element_type=jnp.float32)
    h = jnp.maximum(h + b2_ref[...], 0.0)                      # (F2, TILE_B)

    h = jnp.dot(w3_ref[...], h.astype(w3_ref.dtype),
                preferred_element_type=jnp.float32)
    h = jnp.maximum(h + b3_ref[...], 0.0)                      # (F3, TILE_B)

    # fc4 (out_features == 1): VPU multiply + sublane reduction, not an MXU
    # matmul with a single valid output lane.
    w4 = w4_ref[...].astype(jnp.float32)                       # (F3, 1)
    c = jnp.sum(w4 * h, axis=0, keepdims=True) + b4_ref[...]   # (1, TILE_B)
    out_ref[...] = c.astype(out_ref.dtype)                     # lane-dense


@functools.partial(jax.jit, static_argnames=("tile_b",))
def critic_forward(xh, a, params, *, tile_b=TILE_B):
    B = xh.shape[0]
    # Fuse the two first-layer inputs, pad the batch to a multiple of tile_b,
    # and present a lane-major (features, batch) slab to the kernel.  (Layout
    # plumbing only; all compute stays in the kernel.)
    x_in = jnp.concatenate([xh, a], axis=1)                    # (B, hidden_rnn+1)
    b_pad = ((B + tile_b - 1) // tile_b) * tile_b
    if b_pad != B:
        x_in = jnp.pad(x_in, ((0, b_pad - B), (0, 0)))
    x_t = x_in.T                                               # (hidden_rnn+1, b_pad)

    w1, b1 = params["w1"], params["b1"]
    w2, b2 = params["w2"], params["b2"]
    w3, b3 = params["w3"], params["b3"]
    w4, b4 = params["w4"], params["b4"]

    n_tiles = b_pad // tile_b

    def resident(shape):
        # Constant index_map -> block stays in VMEM across all grid steps.
        return pl.BlockSpec(shape, lambda i: (0, 0))

    out = pl.pallas_call(
        critic_kernel,
        grid=(n_tiles,),
        in_specs=[
            pl.BlockSpec((x_t.shape[0], tile_b), lambda i: (0, i)),
            resident(w1.shape), resident(b1.shape),
            resident(w2.shape), resident(b2.shape),
            resident(w3.shape), resident(b3.shape),
            resident(w4.shape), resident(b4.shape),
        ],
        out_specs=pl.BlockSpec((1, tile_b), lambda i: (0, i)),
        out_shape=jax.ShapeDtypeStruct((1, b_pad), jnp.float32),
        compiler_params=pltpu.CompilerParams(
            dimension_semantics=("parallel",)),
    )(x_t, w1, b1, w2, b2, w3, b3, w4, b4)

    return out[0, :B][:, None]                                 # (B, 1)


def fanin_init(key, shape, fanin=None):
    # Matches the PyTorch fanin_init exactly: bound = 1/sqrt(size[0]) by
    # default (size[0] of an nn.Linear weight is out_features, as in the spec).
    fanin = fanin or shape[0]
    v = 1.0 / np.sqrt(fanin)
    return jax.random.uniform(key, shape, jnp.float32, minval=-v, maxval=v)


def default_bias_init(key, fan_in, shape):
    # nn.Linear default bias init: U(-1/sqrt(fan_in), 1/sqrt(fan_in)).
    bound = 1.0 / np.sqrt(fan_in)
    return jax.random.uniform(key, shape, jnp.float32, minval=-bound, maxval=bound)


def make_params(key, hidden_rnn, hidden_fc1, hidden_fc2, hidden_fc3, init_w,
                weight_dtype=jnp.float32):
    nb_actions = 1
    ks = jax.random.split(key, 10)
    # Weights kept in PyTorch (out, in) layout: the kernel runs on transposed
    # (features, batch) activations, so y^T = W @ x^T directly.
    w1h = fanin_init(ks[0], (hidden_fc1, hidden_rnn))
    w1a = fanin_init(ks[1], (hidden_fc1, nb_actions))
    w2 = fanin_init(ks[2], (hidden_fc2, hidden_fc1))
    w3 = fanin_init(ks[3], (hidden_fc3, hidden_fc2))
    w4 = jax.random.uniform(ks[4], (1, hidden_fc3), jnp.float32,
                            minval=-init_w, maxval=init_w)
    b1h = default_bias_init(ks[5], hidden_rnn, (hidden_fc1, 1))
    b1a = default_bias_init(ks[6], nb_actions, (hidden_fc1, 1))
    b2 = default_bias_init(ks[7], hidden_fc1, (hidden_fc2, 1))
    b3 = default_bias_init(ks[8], hidden_fc2, (hidden_fc3, 1))
    b4 = default_bias_init(ks[9], hidden_fc3, (1, 1))

    w1 = jnp.concatenate([w1h, w1a], axis=1)   # stacked [W1h | W1a]: (F1, hidden_rnn+1)
    b1 = b1h + b1a                             # fold fc1a bias into fc1h bias
    wd = weight_dtype
    return dict(w1=w1.astype(wd), b1=b1,
                w2=w2.astype(wd), b2=b2,
                w3=w3.astype(wd), b3=b3,
                w4=w4.T.astype(wd),            # (F3, 1) for the VPU/reduce path
                b4=b4)


def critic_ref(xh, a, p):
    # Pure-JAX f32 reference (PyTorch semantics) for correctness checking.
    f32 = jnp.float32
    x = jnp.concatenate([xh, a], axis=1)
    x = jax.nn.relu(x @ p["w1"].astype(f32).T + p["b1"][:, 0])
    x = jax.nn.relu(x @ p["w2"].astype(f32).T + p["b2"][:, 0])
    x = jax.nn.relu(x @ p["w3"].astype(f32).T + p["b3"][:, 0])
    return x @ p["w4"].astype(f32) + p["b4"][0, 0]             # (B, 1)


if __name__ == "__main__":
    # Small config consistent with the module's __init__.
    hidden_rnn, hidden_fc1, hidden_fc2, hidden_fc3 = 32, 32, 32, 32
    init_w = 3e-3
    B = 8

    key = jax.random.PRNGKey(0)
    k_xh, k_a, k_p = jax.random.split(key, 3)

    xh = jax.random.normal(k_xh, (B, hidden_rnn), jnp.float32)   # RNN hidden state
    a = jax.random.normal(k_a, (B, 1), jnp.float32)              # action (nb_actions=1)

    # Exact-semantics f32 run.
    params = make_params(k_p, hidden_rnn, hidden_fc1, hidden_fc2, hidden_fc3,
                         init_w, weight_dtype=jnp.float32)
    out = jax.block_until_ready(critic_forward(xh, a, params))
    ref = critic_ref(xh, a, params)
    np.testing.assert_allclose(np.asarray(out), np.asarray(ref),
                               rtol=1e-4, atol=1e-4)
    assert out.shape == (B, 1)

    # bf16-weight run (v6e/v7x-friendly: MXU-native operands, half weight DMA;
    # elementwise math stays f32 so it is also v5e-safe).
    params_bf16 = dict(params,
                       w1=params["w1"].astype(jnp.bfloat16),
                       w2=params["w2"].astype(jnp.bfloat16),
                       w3=params["w3"].astype(jnp.bfloat16),
                       w4=params["w4"].astype(jnp.bfloat16))
    out_bf16 = jax.block_until_ready(critic_forward(xh, a, params_bf16))
    np.testing.assert_allclose(np.asarray(out_bf16), np.asarray(ref),
                               rtol=2e-2, atol=2e-2)

    print("KERNEL_OK")
</pallas_src>

<mosaic_0001>
module attributes {stable_mosaic.version = 11 : i64} {
  func.func @critic_kernel(%arg0: i32, %arg1: memref<33x128xf32, #tpu.memory_space<vmem>>, %arg2: memref<32x33xf32, #tpu.memory_space<vmem>>, %arg3: memref<32x1xf32, #tpu.memory_space<vmem>>, %arg4: memref<32x32xf32, #tpu.memory_space<vmem>>, %arg5: memref<32x1xf32, #tpu.memory_space<vmem>>, %arg6: memref<32x32xf32, #tpu.memory_space<vmem>>, %arg7: memref<32x1xf32, #tpu.memory_space<vmem>>, %arg8: memref<32x1xf32, #tpu.memory_space<vmem>>, %arg9: memref<1x1xf32, #tpu.memory_space<vmem>>, %arg10: memref<1x128xf32, #tpu.memory_space<vmem>>) attributes {dimension_semantics = [#tpu.dimension_semantics<parallel>], iteration_bounds = array<i64: 1>, scalar_prefetch = 0 : i64, scratch_operands = 0 : i64, tpu.core_type = #tpu.core_type<tc>, window_params = [{transform_indices = @transform_0, window_bounds = array<i64: 33, 128>}, {pipeline_mode = #tpu.pipeline_mode<synchronous>, transform_indices = @transform_1, window_bounds = array<i64: 32, 33>}, {pipeline_mode = #tpu.pipeline_mode<synchronous>, transform_indices = @transform_2, window_bounds = array<i64: 32, 1>}, {pipeline_mode = #tpu.pipeline_mode<synchronous>, transform_indices = @transform_3, window_bounds = array<i64: 32, 32>}, {pipeline_mode = #tpu.pipeline_mode<synchronous>, transform_indices = @transform_4, window_bounds = array<i64: 32, 1>}, {pipeline_mode = #tpu.pipeline_mode<synchronous>, transform_indices = @transform_5, window_bounds = array<i64: 32, 32>}, {pipeline_mode = #tpu.pipeline_mode<synchronous>, transform_indices = @transform_6, window_bounds = array<i64: 32, 1>}, {pipeline_mode = #tpu.pipeline_mode<synchronous>, transform_indices = @transform_7, window_bounds = array<i64: 32, 1>}, {pipeline_mode = #tpu.pipeline_mode<synchronous>, transform_indices = @transform_8, window_bounds = array<i64: 1, 1>}, {transform_indices = @transform_9, window_bounds = array<i64: 1, 128>}]} {
    %c0 = arith.constant 0 : index
    %c0_0 = arith.constant 0 : index
    %0 = vector.load %arg1[%c0, %c0_0] : memref<33x128xf32, #tpu.memory_space<vmem>>, vector<33x128xf32>
    %c0_1 = arith.constant 0 : index
    %c0_2 = arith.constant 0 : index
    %1 = vector.load %arg2[%c0_1, %c0_2] : memref<32x33xf32, #tpu.memory_space<vmem>>, vector<32x33xf32>
    %cst = arith.constant dense<0.000000e+00> : vector<32x128xf32>
    %2 = tpu.matmul %1, %0, %cst {dimension_numbers = #tpu.dot_dimension_numbers<[1], [0], [0], [1], [0, 0, 1, 1], [], []>} : vector<32x33xf32>, vector<33x128xf32>, vector<32x128xf32> -> vector<32x128xf32>
    %c0_3 = arith.constant 0 : index
    %c0_4 = arith.constant 0 : index
    %3 = vector.load %arg3[%c0_3, %c0_4] : memref<32x1xf32, #tpu.memory_space<vmem>>, vector<32x1xf32>
    %4 = vector.broadcast %3 : vector<32x1xf32> to vector<32x128xf32>
    %5 = arith.addf %2, %4 : vector<32x128xf32>
    %cst_5 = arith.constant 0.000000e+00 : f32
    %6 = vector.broadcast %cst_5 : f32 to vector<32x128xf32>
    %7 = arith.maximumf %5, %6 : vector<32x128xf32>
    %c0_6 = arith.constant 0 : index
    %c0_7 = arith.constant 0 : index
    %8 = vector.load %arg4[%c0_6, %c0_7] : memref<32x32xf32, #tpu.memory_space<vmem>>, vector<32x32xf32>
    %cst_8 = arith.constant dense<0.000000e+00> : vector<32x128xf32>
    %9 = tpu.matmul %8, %7, %cst_8 {dimension_numbers = #tpu.dot_dimension_numbers<[1], [0], [0], [1], [0, 0, 1, 1], [], []>} : vector<32x32xf32>, vector<32x128xf32>, vector<32x128xf32> -> vector<32x128xf32>
    %c0_9 = arith.constant 0 : index
    %c0_10 = arith.constant 0 : index
    %10 = vector.load %arg5[%c0_9, %c0_10] : memref<32x1xf32, #tpu.memory_space<vmem>>, vector<32x1xf32>
    %11 = vector.broadcast %10 : vector<32x1xf32> to vector<32x128xf32>
    %12 = arith.addf %9, %11 : vector<32x128xf32>
    %cst_11 = arith.constant 0.000000e+00 : f32
    %13 = vector.broadcast %cst_11 : f32 to vector<32x128xf32>
    %14 = arith.maximumf %12, %13 : vector<32x128xf32>
    %c0_12 = arith.constant 0 : index
    %c0_13 = arith.constant 0 : index
    %15 = vector.load %arg6[%c0_12, %c0_13] : memref<32x32xf32, #tpu.memory_space<vmem>>, vector<32x32xf32>
    %cst_14 = arith.constant dense<0.000000e+00> : vector<32x128xf32>
    %16 = tpu.matmul %15, %14, %cst_14 {dimension_numbers = #tpu.dot_dimension_numbers<[1], [0], [0], [1], [0, 0, 1, 1], [], []>} : vector<32x32xf32>, vector<32x128xf32>, vector<32x128xf32> -> vector<32x128xf32>
    %c0_15 = arith.constant 0 : index
    %c0_16 = arith.constant 0 : index
    %17 = vector.load %arg7[%c0_15, %c0_16] : memref<32x1xf32, #tpu.memory_space<vmem>>, vector<32x1xf32>
    %18 = vector.broadcast %17 : vector<32x1xf32> to vector<32x128xf32>
    %19 = arith.addf %16, %18 : vector<32x128xf32>
    %cst_17 = arith.constant 0.000000e+00 : f32
    %20 = vector.broadcast %cst_17 : f32 to vector<32x128xf32>
    %21 = arith.maximumf %19, %20 : vector<32x128xf32>
    %c0_18 = arith.constant 0 : index
    %c0_19 = arith.constant 0 : index
    %22 = vector.load %arg8[%c0_18, %c0_19] : memref<32x1xf32, #tpu.memory_space<vmem>>, vector<32x1xf32>
    %23 = vector.broadcast %22 : vector<32x1xf32> to vector<32x128xf32>
    %24 = arith.mulf %23, %21 : vector<32x128xf32>
    %cst_20 = arith.constant dense<0.000000e+00> : vector<128xf32>
    %25 = vector.multi_reduction <add>, %24, %cst_20 [0] : vector<32x128xf32> to vector<128xf32>
    %26 = vector.shape_cast %25 : vector<128xf32> to vector<1x128xf32>
    %c0_21 = arith.constant 0 : index
    %c0_22 = arith.constant 0 : index
    %27 = vector.load %arg9[%c0_21, %c0_22] : memref<1x1xf32, #tpu.memory_space<vmem>>, vector<1x1xf32>
    %28 = vector.broadcast %27 : vector<1x1xf32> to vector<1x128xf32>
    %29 = arith.addf %26, %28 : vector<1x128xf32>
    %c0_23 = arith.constant 0 : index
    %c0_24 = arith.constant 0 : index
    %30 = vector.load %arg10[%c0_23, %c0_24] : memref<1x128xf32, #tpu.memory_space<vmem>>, vector<1x128xf32>
    tpu.vector_store %arg10[%c0_23, %c0_24], %29 {strides = array<i32>} : memref<1x128xf32, #tpu.memory_space<vmem>>, vector<1x128xf32>,
    return
  }
  func.func @transform_0(%arg0: i32) -> (i32, i32) {
    %c0_i32 = arith.constant 0 : i32
    %c0_i32_0 = arith.constant 0 : i32
    return %c0_i32, %arg0 : i32, i32
  }
  func.func @transform_1(%arg0: i32) -> (i32, i32) {
    %c0_i32 = arith.constant 0 : i32
    %c0_i32_0 = arith.constant 0 : i32
    %c0_i32_1 = arith.constant 0 : i32
    return %c0_i32, %c0_i32_0 : i32, i32
  }
  func.func @transform_2(%arg0: i32) -> (i32, i32) {
    %c0_i32 = arith.constant 0 : i32
    %c0_i32_0 = arith.constant 0 : i32
    %c0_i32_1 = arith.constant 0 : i32
    return %c0_i32, %c0_i32_0 : i32, i32
  }
  func.func @transform_3(%arg0: i32) -> (i32, i32) {
    %c0_i32 = arith.constant 0 : i32
    %c0_i32_0 = arith.constant 0 : i32
    %c0_i32_1 = arith.constant 0 : i32
    return %c0_i32, %c0_i32_0 : i32, i32
  }
  func.func @transform_4(%arg0: i32) -> (i32, i32) {
    %c0_i32 = arith.constant 0 : i32
    %c0_i32_0 = arith.constant 0 : i32
    %c0_i32_1 = arith.constant 0 : i32
    return %c0_i32, %c0_i32_0 : i32, i32
  }
  func.func @transform_5(%arg0: i32) -> (i32, i32) {
    %c0_i32 = arith.constant 0 : i32
    %c0_i32_0 = arith.constant 0 : i32
    %c0_i32_1 = arith.constant 0 : i32
    return %c0_i32, %c0_i32_0 : i32, i32
  }
  func.func @transform_6(%arg0: i32) -> (i32, i32) {
    %c0_i32 = arith.constant 0 : i32
    %c0_i32_0 = arith.constant 0 : i32
    %c0_i32_1 = arith.constant 0 : i32
    return %c0_i32, %c0_i32_0 : i32, i32
  }
  func.func @transform_7(%arg0: i32) -> (i32, i32) {
    %c0_i32 = arith.constant 0 : i32
    %c0_i32_0 = arith.constant 0 : i32
    %c0_i32_1 = arith.constant 0 : i32
    return %c0_i32, %c0_i32_0 : i32, i32
  }
  func.func @transform_8(%arg0: i32) -> (i32, i32) {
    %c0_i32 = arith.constant 0 : i32
    %c0_i32_0 = arith.constant 0 : i32
    %c0_i32_1 = arith.constant 0 : i32
    return %c0_i32, %c0_i32_0 : i32, i32
  }
  func.func @transform_9(%arg0: i32) -> (i32, i32) {
    %c0_i32 = arith.constant 0 : i32
    %c0_i32_0 = arith.constant 0 : i32
    return %c0_i32, %arg0 : i32, i32
  }
}

</mosaic_0001>

<bundles_post_ra>
// kernel: critic_forward.1
= control target key start
LH: loop header
LB: loop body
LE: loop exit
PB: predicated region body
PF: predicated region fallthrough
CT: control target
= control target key end

     0   :  { %vm80_vm0 = vcmask 1040384   ;;  %vm67_vm1 = vcmask 269312   ;;  %v578_v2 = vmov 0   ;;  %vm201_vm2 = vcmask 261120   ;;  %s746_s0 = inlined_call_operand.vmem [shape: f32[33,128], index: 0, kind: input, shape index: {}]   ;;  %s747_s1 = inlined_call_operand.vmem [shape: f32[32,33], index: 1, kind: input, shape index: {}]   ;;  %s748_s8 = inlined_call_operand.<no memory space> [shape: f32[1,1], index: 8, kind: input, shape index: {}]   ;;  %s749_s2 = inlined_call_operand.vmem [shape: f32[32,1], index: 2, kind: input, shape index: {}]   ;;  %s750_s4 = inlined_call_operand.vmem [shape: f32[32,1], index: 4, kind: input, shape index: {}]   ;;  %s751_s6 = inlined_call_operand.vmem [shape: f32[32,1], index: 6, kind: input, shape index: {}]   ;;  %s752_s7 = inlined_call_operand.vmem [shape: f32[32,1], index: 7, kind: input, shape index: {}]   ;;  %s753_s3 = inlined_call_operand.vmem [shape: f32[32,32], index: 3, kind: input, shape index: {}]   ;;  %s754_s5 = inlined_call_operand.vmem [shape: f32[32,32], index: 5, kind: input, shape index: {}]   ;;  %s755_s9 = inlined_call_operand.vmem [shape: f32[1,128], index: 9, kind: output, shape index: {}]  }
   0x1   :  { %v38_v0 = vld [vmem:[%s746_s0 + $0x20] sm:$0x1]  ;;  %v37_v1 = vld [vmem:[%s746_s0 + $0x18] sm:$0xff]  ;;  %576 = vset.pattern.permute.xlu0 %v578_v2  ;;  %577 = vset.pattern.permute.xlu1 %v578_v2  ;;  %v14_v3 = vstv %s748_s8  ;;  %v36_v5 = vld [vmem:[%s746_s0 + $0x10] sm:$0xff] }
   0x2   :  { %523 = vmatprep.subr.msk.mxu0 %vm80_vm0, %v38_v0  ;;  %v39_v4 = vld [vmem:[%s747_s1] sm:$0xff]  ;;  %15 = vst [vmem:[#allocation2] sm:$0x1] %v14_v3  ;;  %v46_v6 = vld [vmem:[%s749_s2 + $0x18] sm:$0xff]  ;;  %v35_v7 = vld [vmem:[%s746_s0 + $0x8] sm:$0xff] }
   0x3   :  { %524 = vmatpush3.msk.msra.mxu0 %vm80_vm0, %v38_v0  ;;  %533 = vmatprep.mubr.msk.f32.mxu0 %vm67_vm1, %v39_v4  ;;  %v44_v8 = vld [vmem:[%s749_s2 + $0x8] sm:$0xff]  ;;  %v45_v9 = vld [vmem:[%s749_s2 + $0x10] sm:$0xff]  ;;  %v34_v10 = vld [vmem:[%s746_s0] sm:$0xff] }
   0x4   :  { %525 = vmatprep.subr.mxu0 %v37_v1  ;;  %64 = vperm.xlu0 %576, %v46_v6   ;;  %v43_v11 = vld [vmem:[%s749_s2] sm:$0xff]  ;;  %v40_v12 = vld [vmem:[%s747_s1 + $0x8] sm:$0xff]  ;;  %v41_v13 = vld [vmem:[%s747_s1 + $0x10] sm:$0xff] }
   0x5   :  { %526 = vmatpush3.msra.mxu0 %v37_v1  ;;  %54 = vperm.xlu1 %577, %v44_v8   ;;  %v180_v14 = vld [vmem:[%s750_s4 + $0x18] sm:$0xff]  ;;  %v179_v15 = vld [vmem:[%s750_s4 + $0x10] sm:$0xff]  ;;  %v178_v17 = vld [vmem:[%s750_s4 + $0x8] sm:$0xff] }
   0x6   :  { %527 = vmatprep.subr.mxu0 %v36_v5  ;;  %v42_v16 = vld [vmem:[%s747_s1 + $0x18] sm:$0xff]  ;;  %v177_v18 = vld [vmem:[%s750_s4] sm:$0xff]  ;;  %v308_v20 = vld [vmem:[%s751_s6 + $0x8] sm:$0xff] }
   0x7   :  { %528 = vmatpush3.msra.mxu0 %v36_v5  ;;  %v307_v19 = vld [vmem:[%s751_s6] sm:$0xff]  ;;  %v309_v21 = vld [vmem:[%s751_s6 + $0x10] sm:$0xff]  ;;  %v310_v22 = vld [vmem:[%s751_s6 + $0x18] sm:$0xff] }
   0x8   :  { %529 = vmatprep.subr.mxu0 %v35_v7  ;;  %59 = vperm.xlu0 %576, %v45_v9   ;;  %v432_v23 = vld [vmem:[%s752_s7] sm:$0xff]  ;;  %v433_v24 = vld [vmem:[%s752_s7 + $0x8] sm:$0xff]  ;;  %v434_v25 = vld [vmem:[%s752_s7 + $0x10] sm:$0xff] }
   0x9   :  { %530 = vmatpush3.msra.mxu0 %v35_v7  ;;  %49 = vperm.xlu1 %577, %v43_v11   ;;  %v435_v26 = vld [vmem:[%s752_s7 + $0x18] sm:$0xff]  ;;  %v469_v27 = vld [vmem:[#allocation2] sm:$0x1]  ;;  %v174_v45 = vld [vmem:[%s753_s3 + $0x8] sm:$0xff] }
   0xa   :  { %531 = vmatprep.subr.mxu0 %v34_v10  ;;  %v173_v28 = vld [vmem:[%s753_s3] sm:$0xff]  ;;  %v175_v46 = vld [vmem:[%s753_s3 + $0x10] sm:$0xff]  ;;  %v176_v47 = vld [vmem:[%s753_s3 + $0x18] sm:$0xff] }
   0xb   :  { %532 = vmatpush3.msra.mxu0 %v34_v10  ;;  %547 = vmatprep.mubr.msk.f32.mxu1 %vm201_vm2, %v173_v28  ;;  %v303_v48 = vld [vmem:[%s754_s5] sm:$0xff]  ;;  %v305_v49 = vld [vmem:[%s754_s5 + $0x10] sm:$0xff]  ;;  %v304_v2 = vld [vmem:[%s754_s5 + $0x8] sm:$0xff] }
   0xc   :  { %534 = vmatmul.mubr.msk.f32.vlgmr.msra.gmra.mxu0 %vm67_vm1, %v40_v12  ;;  %198 = vperm.xlu0 %576, %v180_v14   ;;  %v306_v3 = vld [vmem:[%s754_s5 + $0x18] sm:$0xff] }
   0xd   :  { %536 = vmatprep.mubr.msk.f32.mxu0 %vm67_vm1, %v41_v13  ;;  %193 = vperm.xlu1 %577, %v179_v15  }
  0x10   :  { %537 = vmatmul.mubr.msk.f32.gmra.mxu0 %vm67_vm1, %v42_v16  ;;  %188 = vperm.xlu0 %576, %v178_v17  }
  0x11   :  { %183 = vperm.xlu1 %577, %v177_v18   ;;  %561 = vmatprep.mubr.msk.f32.mxu0 %vm201_vm2, %v303_v48 }
  0x14   :  { %313 = vperm.xlu0 %576, %v307_v19  }
  0x15   :  { %318 = vperm.xlu1 %577, %v308_v20  }
  0x18   :  { %323 = vperm.xlu0 %576, %v309_v21  }
  0x19   :  { %328 = vperm.xlu1 %577, %v310_v22  }
  0x1c   :  { %438 = vperm.xlu0 %576, %v432_v23  }
  0x1d   :  { %443 = vperm.xlu1 %577, %v433_v24  }
  0x20   :  { %448 = vperm.xlu0 %576, %v434_v25  }
  0x21   :  { %453 = vperm.xlu1 %577, %v435_v26  }
  0x24   :  { %472 = vperm.xlu0 %576, %v469_v27  }
  0x7f   :  { %v65_v29 = vpop.permute.xlu0 %64 }
  0x80   :  { %v55_v31 = vpop.permute.xlu1 %54 }
  0x83   :  { %v60_v35 = vpop.permute.xlu0 %59 }
  0x84   :  { %v50_v40 = vpop.permute.xlu1 %49 }
  0x87   :  { %v199_v50 = vpop.permute.xlu0 %198 }
  0x88   :  { %v194_v52 = vpop.permute.xlu1 %193 }
  0x8b   :  { %v189_v56 = vpop.permute.xlu0 %188 }
  0x8c   :  { %v184_v61 = vpop.permute.xlu1 %183 }
  0x8f   :  { %v314_v4 = vpop.permute.xlu0 %313 }
  0x90   :  { %v319_v5 = vpop.permute.xlu1 %318 }
  0x93   :  { %v324_v6 = vpop.permute.xlu0 %323 }
  0x94   :  { %v329_v7 = vpop.permute.xlu1 %328 }
  0x97   :  { %v439_v10 = vpop.permute.xlu0 %438 }
  0x98   :  { %v444_v18 = vpop.permute.xlu1 %443 }
  0x9b   :  { %v449_v24 = vpop.permute.xlu0 %448 }
  0x9c   :  { %v454_v27 = vpop.permute.xlu1 %453 }
  0xcc   :  { %v535_v30 = vpop.f32.mrf.mxu0 }
  0xcd   :  { %v156_v37 = vadd.f32 %v535_v30, %v55_v31  ;;  %v475_v30 = vlaneseq }
  0xce   :  { %v150_v32 = vpop.f32.mrf.mxu0 }
  0xcf   :  { %v151_v41 = vadd.f32 %v150_v32, %v50_v40  ;;  %v170_v43 = vmax.f32 %v156_v37, 0.0 }
  0xd0   :  { %v538_v33 = vpop.f32.mrf.mxu0 }
  0xd1   :  { %v166_v34 = vadd.f32 %v538_v33, %v65_v29  ;;  %v169_v44 = vmax.f32 %v151_v41, 0.0  ;;  %v476_v33 = vshrl.u32 %v475_v30, 7 }
  0xd2   :  { %v160_v36 = vpop.f32.mrf.mxu0 }
  0xd3   :  { %v172_v38 = vmax.f32 %v166_v34, 0.0  ;;  %v161_v39 = vadd.f32 %v160_v36, %v60_v35  ;;  %v477_v36 = vsub.s32 0, %v476_v33 }
  0xd5   :  { %v171_v42 = vmax.f32 %v161_v39, 0.0  ;;  %539 = vmatprep.subr.mxu1 %v172_v38 }
  0xd6   :  { %540 = vmatpush3.msra.mxu1 %v172_v38  ;;  %v473_v38 = vpop.permute.xlu0 %472 }
  0xd7   :  { %541 = vmatprep.subr.mxu1 %v171_v42  ;;  %v478_v40 = vrot.slane %v473_v38, %v477_v36 }
  0xd8   :  { %542 = vmatpush3.msra.mxu1 %v171_v42 }
  0xd9   :  { %543 = vmatprep.subr.mxu1 %v170_v43 }
  0xda   :  { %544 = vmatpush3.msra.mxu1 %v170_v43 }
  0xdb   :  { %545 = vmatprep.subr.mxu1 %v169_v44 }
  0xdc   :  { %546 = vmatpush3.msra.mxu1 %v169_v44 }
  0xdd   :  { %548 = vmatmul.mubr.msk.f32.vlgmr.msra.gmra.mxu1 %vm201_vm2, %v174_v45 }
  0xde   :  { %550 = vmatprep.mubr.msk.f32.mxu1 %vm201_vm2, %v175_v46 }
  0xe1   :  { %551 = vmatmul.mubr.msk.f32.gmra.mxu1 %vm201_vm2, %v176_v47 }
  0xe2   :  { %564 = vmatprep.mubr.msk.f32.mxu1 %vm201_vm2, %v305_v49 }
 0x19d   :  { %v549_v51 = vpop.f32.mrf.mxu1 }
 0x19e   :  { %v286_v58 = vadd.f32 %v549_v51, %v189_v56 }
 0x19f   :  { %v280_v53 = vpop.f32.mrf.mxu1 }
 0x1a0   :  { %v281_v62 = vadd.f32 %v280_v53, %v184_v61  ;;  %v300_v0 = vmax.f32 %v286_v58, 0.0 }
 0x1a1   :  { %v552_v54 = vpop.f32.mrf.mxu1 }
 0x1a2   :  { %v296_v55 = vadd.f32 %v552_v54, %v199_v50  ;;  %v299_v1 = vmax.f32 %v281_v62, 0.0 }
 0x1a3   :  { %v290_v57 = vpop.f32.mrf.mxu1 }
 0x1a4   :  { %v302_v59 = vmax.f32 %v296_v55, 0.0  ;;  %v291_v60 = vadd.f32 %v290_v57, %v194_v52 }
 0x1a6   :  { %v301_v63 = vmax.f32 %v291_v60, 0.0  ;;  %553 = vmatprep.subr.mxu0 %v302_v59  ;;  %567 = vmatprep.subr.mxu1 %v302_v59 }
 0x1a7   :  { %554 = vmatpush3.msra.mxu0 %v302_v59  ;;  %571 = vmatpush3.msra.mxu1 %v302_v59 }
 0x1a8   :  { %555 = vmatprep.subr.mxu0 %v301_v63  ;;  %568 = vmatprep.subr.mxu1 %v301_v63 }
 0x1a9   :  { %556 = vmatpush3.msra.mxu0 %v301_v63  ;;  %572 = vmatpush3.msra.mxu1 %v301_v63 }
 0x1aa   :  { %557 = vmatprep.subr.mxu0 %v300_v0  ;;  %569 = vmatprep.subr.mxu1 %v300_v0 }
 0x1ab   :  { %558 = vmatpush3.msra.mxu0 %v300_v0  ;;  %573 = vmatpush3.msra.mxu1 %v300_v0 }
 0x1ac   :  { %559 = vmatprep.subr.mxu0 %v299_v1  ;;  %570 = vmatprep.subr.mxu1 %v299_v1 }
 0x1ad   :  { %560 = vmatpush3.msra.mxu0 %v299_v1  ;;  %574 = vmatpush3.msra.mxu1 %v299_v1 }
 0x1ae   :  { %562 = vmatmul.mubr.msk.f32.vlgmr.msra.gmra.mxu0 %vm201_vm2, %v304_v2  ;;  %565 = vmatmul.mubr.msk.f32.vlgmr.msra.gmra.mxu1 %vm201_vm2, %v306_v3 }
 0x26e   :  { %v563_v8 = vpop.f32.mrf.mxu0  ;;  %v566_v9 = vpop.f32.mrf.mxu1 }
 0x26f   :  { %v415_v11 = vadd.f32 %v563_v8, %v319_v5  ;;  %v425_v15 = vadd.f32 %v566_v9, %v329_v7 }
 0x270   :  { %v409_v12 = vpop.f32.mrf.mxu0  ;;  %v419_v13 = vpop.f32.mrf.mxu1 }
 0x271   :  { %v429_v14 = vmax.f32 %v415_v11, 0.0  ;;  %v410_v16 = vadd.f32 %v409_v12, %v314_v4  ;;  %v420_v17 = vadd.f32 %v419_v13, %v324_v6  ;;  %v431_v22 = vmax.f32 %v425_v15, 0.0 }
 0x273   :  { %v428_v19 = vmax.f32 %v410_v16, 0.0  ;;  %v430_v20 = vmax.f32 %v420_v17, 0.0  ;;  %v457_v21 = vmul.f32 %v444_v18, %v429_v14  ;;  %v459_v28 = vmul.f32 %v454_v27, %v431_v22 }
 0x275   :  { %v456_v23 = vmul.f32 %v439_v10, %v428_v19  ;;  %v458_v26 = vmul.f32 %v449_v24, %v430_v20 }
 0x277   :  { %v460_v25 = vadd.f32 %v457_v21, %v456_v23 }
 0x279   :  { %v461_v29 = vadd.f32 %v460_v25, %v458_v26 }
 0x27b   :  { %v462_v31 = vadd.f32 %v461_v29, %v459_v28 }
 0x27d   :  { %v463_v32 = vrot.slane %v462_v31, 4 }
 0x27f   :  { %v464_v34 = vadd.f32 %v463_v32, %v462_v31 }
 0x281   :  { %v465_v35 = vrot.slane %v464_v34, 2 }
 0x283   :  { %v466_v37 = vadd.f32 %v465_v35, %v464_v34 }
 0x285   :  { %v467_v39 = vrot.slane %v466_v37, 1 }
 0x287   :  { %v468_v41 = vadd.f32 %v467_v39, %v466_v37 }
 0x289   :  { %v479_v42 = vadd.f32 %v478_v40, %v468_v41 }
 0x28b   :  { %480 = vst [vmem:[%s755_s9] sm:$0x1] %v479_v42 }

</bundles_post_ra>
